<compile_context>
chip_gen: v7x
topology: tpu7x:2x2x1
jax: 0.10.0
libtpu: 0.0.40
codegen_flags: <defaults>
</compile_context>

<pallas_src>
import jax
import jax.numpy as jnp
from jax.experimental import pallas as pl
from jax.experimental.pallas import tpu as pltpu

_LANE = 128
_WIDTH_CANDIDATES = (4096, 2048, 1024, 512, 256, 128)


def _swish_kernel(beta_ref, x_ref, o_ref):
    # beta_ref: SMEM scalar (shape (1,)); x_ref / o_ref: VMEM tiles.
    beta = beta_ref[0]
    x = x_ref[...].astype(jnp.float32)
    # sigmoid(z) == 0.5 * (1 + tanh(0.5 * z)): one EUP transcendental per vreg
    # instead of exp + reciprocal (two EUP pushes).
    sig = 0.5 * (1.0 + jnp.tanh(0.5 * beta * x))
    o_ref[...] = (x * sig).astype(o_ref.dtype)


def _vmem_capacity_bytes() -> int:
    try:
        return int(pltpu.get_tpu_info().vmem_capacity_bytes)
    except Exception:
        return 64 * 1024 * 1024  # conservative default (v7x per-TC VMEM)


def _pick_width(n: int) -> int:
    """Widest lane-dense slab width for n elements (0 => too small, use jnp)."""
    # Prefer an exact divisor (no tail at all).
    for w in _WIDTH_CANDIDATES:
        if n % w == 0 and n // w >= 1:
            return w
    # Otherwise the widest width that still gives a sublane's worth of rows.
    for w in _WIDTH_CANDIDATES:
        if n // w >= 8:
            return w
    # Last resort: any width with at least one full row.
    for w in _WIDTH_CANDIDATES:
        if n // w >= 1:
            return w
    return 0


def _swish_bulk(x2d: jnp.ndarray, beta_f32: jnp.ndarray) -> jnp.ndarray:
    """Run the Pallas kernel on a lane-dense (rows, W) slab."""
    rows, W = x2d.shape
    itemsize = jnp.dtype(x2d.dtype).itemsize
    sublane = max(8, 32 // itemsize)  # 8 for f32, 16 for bf16, 32 for int8

    vmem_cap = _vmem_capacity_bytes()
    # ~8 MiB blocks; footprint ~= 4x tile (in+out, double-buffered) so cap the
    # tile at vmem_cap // 8 to keep headroom on v7x (64 MiB per TC).
    tile_bytes_target = min(8 * 1024 * 1024, vmem_cap // 8)
    target_elems = max(1, tile_bytes_target // itemsize)

    tile_rows = max(1, target_elems // W)
    tile_rows = max(sublane, (tile_rows // sublane) * sublane)
    if tile_rows >= rows:
        if rows >= 2 * sublane:
            # Whole tensor fits in one block: split into >= 2 grid steps so
            # both v7x TensorCores get work (neutral on 1-TC v5e/v6e).
            tile_rows = pl.cdiv(pl.cdiv(rows, 2), sublane) * sublane
        else:
            tile_rows = rows  # full-extent block (always legal)

    grid = (pl.cdiv(rows, tile_rows),)  # partial last block handled by Pallas

    tile_bytes = tile_rows * W * itemsize
    vmem_limit = max(
        16 * 1024 * 1024,
        min((3 * vmem_cap) // 4, 4 * tile_bytes + 8 * 1024 * 1024),
    )

    return pl.pallas_call(
        _swish_kernel,
        out_shape=jax.ShapeDtypeStruct((rows, W), x2d.dtype),
        grid_spec=pltpu.PrefetchScalarGridSpec(
            num_scalar_prefetch=1,  # beta -> SMEM
            grid=grid,
            in_specs=[pl.BlockSpec((tile_rows, W), lambda i, beta: (i, 0))],
            out_specs=pl.BlockSpec((tile_rows, W), lambda i, beta: (i, 0)),
        ),
        compiler_params=pltpu.CompilerParams(
            dimension_semantics=("parallel",),
            vmem_limit_bytes=int(vmem_limit),
        ),
    )(beta_f32, x2d)


def swish(x: jnp.ndarray, beta: jnp.ndarray) -> jnp.ndarray:
    """Swish with scalar beta (shape (1,)), elementwise on any-shaped x."""
    orig_shape = x.shape
    orig_dtype = x.dtype
    n = x.size
    beta_f32 = jnp.asarray(beta, jnp.float32).reshape((1,))

    x_flat = jnp.ravel(x)
    W = _pick_width(n)
    if W == 0:
        # Tiny tensor: not worth a kernel launch.
        xf = x_flat.astype(jnp.float32)
        y = xf * jax.nn.sigmoid(beta_f32[0] * xf)
        return y.astype(orig_dtype).reshape(orig_shape)

    n_bulk = (n // W) * W
    bulk = x_flat[:n_bulk].reshape(n_bulk // W, W)
    out_bulk = _swish_bulk(bulk, beta_f32)

    if n_bulk == n:
        return out_bulk.reshape(orig_shape)

    # Ragged tail (< W elements): plain jnp, avoids padding the full tensor.
    tail = x_flat[n_bulk:].astype(jnp.float32)
    out_tail = (tail * jax.nn.sigmoid(beta_f32[0] * tail)).astype(orig_dtype)
    return jnp.concatenate([out_bulk.reshape(-1), out_tail]).reshape(orig_shape)


if __name__ == "__main__":
    key = jax.random.PRNGKey(0)

    # Deterministic parameter init: nn.Parameter(torch.ones(1))
    beta = jnp.ones((1,), dtype=jnp.float32)

    # Primary check: NCHW input consistent with a conv-style model.
    x = jax.random.normal(key, (2, 4, 16, 16), dtype=jnp.float32)
    out = jax.block_until_ready(swish(x, beta))
    ref = x * jax.nn.sigmoid(beta[0] * x)
    assert out.shape == x.shape and out.dtype == x.dtype
    assert jnp.allclose(out, ref, atol=1e-5, rtol=1e-5)

    # Secondary check: ragged size (exercises the bulk + jnp-tail path).
    x2 = jax.random.normal(jax.random.PRNGKey(1), (3, 5, 7, 11), dtype=jnp.float32)
    out2 = jax.block_until_ready(swish(x2, beta))
    ref2 = x2 * jax.nn.sigmoid(beta[0] * x2)
    assert out2.shape == x2.shape and out2.dtype == x2.dtype
    assert jnp.allclose(out2, ref2, atol=1e-5, rtol=1e-5)

    print("KERNEL_OK")
</pallas_src>

<mosaic_0001>
module attributes {stable_mosaic.version = 11 : i64} {
  func.func @_swish_kernel(%arg0: i32, %arg1: memref<1xf32, #tpu.memory_space<smem>>, %arg2: memref<1x2048xf32, #tpu.memory_space<vmem>>, %arg3: memref<1x2048xf32, #tpu.memory_space<vmem>>) attributes {dimension_semantics = [#tpu.dimension_semantics<parallel>], iteration_bounds = array<i64: 1>, scalar_prefetch = 1 : i64, scratch_operands = 0 : i64, tpu.core_type = #tpu.core_type<tc>, window_params = [{transform_indices = @transform_0, window_bounds = array<i64: 1, 2048>}, {transform_indices = @transform_1, window_bounds = array<i64: 1, 2048>}]} {
    %c0 = arith.constant 0 : index
    %0 = memref.load %arg1[%c0] : memref<1xf32, #tpu.memory_space<smem>>
    %c0_0 = arith.constant 0 : index
    %c0_1 = arith.constant 0 : index
    %1 = vector.load %arg2[%c0_0, %c0_1] : memref<1x2048xf32, #tpu.memory_space<vmem>>, vector<1x2048xf32>
    %cst = arith.constant 5.000000e-01 : f32
    %2 = arith.mulf %cst, %0 : f32
    %3 = vector.broadcast %2 : f32 to vector<1x2048xf32>
    %4 = arith.mulf %3, %1 : vector<1x2048xf32>
    %5 = math.tanh %4 : vector<1x2048xf32>
    %cst_2 = arith.constant 1.000000e+00 : f32
    %6 = vector.broadcast %cst_2 : f32 to vector<1x2048xf32>
    %7 = arith.addf %6, %5 : vector<1x2048xf32>
    %cst_3 = arith.constant 5.000000e-01 : f32
    %8 = vector.broadcast %cst_3 : f32 to vector<1x2048xf32>
    %9 = arith.mulf %8, %7 : vector<1x2048xf32>
    %10 = arith.mulf %1, %9 : vector<1x2048xf32>
    %c0_4 = arith.constant 0 : index
    %c0_5 = arith.constant 0 : index
    %11 = vector.load %arg3[%c0_4, %c0_5] : memref<1x2048xf32, #tpu.memory_space<vmem>>, vector<1x2048xf32>
    tpu.vector_store %arg3[%c0_4, %c0_5], %10 {strides = array<i32>} : memref<1x2048xf32, #tpu.memory_space<vmem>>, vector<1x2048xf32>,
    return
  }
  func.func @transform_0(%arg0: i32, %arg1: memref<1xf32, #tpu.memory_space<smem>>) -> (i32, i32) {
    %c0_i32 = arith.constant 0 : i32
    %c0_i32_0 = arith.constant 0 : i32
    return %arg0, %c0_i32 : i32, i32
  }
  func.func @transform_1(%arg0: i32, %arg1: memref<1xf32, #tpu.memory_space<smem>>) -> (i32, i32) {
    %c0_i32 = arith.constant 0 : i32
    %c0_i32_0 = arith.constant 0 : i32
    return %arg0, %c0_i32 : i32, i32
  }
}

</mosaic_0001>

<bundles_post_ra>
// kernel: tpu_custom_call.1
= control target key start
LH: loop header
LB: loop body
LE: loop exit
PB: predicated region body
PF: predicated region fallthrough
CT: control target
= control target key end

     0   :  { %8 = vsyncpa [#allocation5], 0  ;;  %s153_s0 = inlined_call_operand.<no memory space> [shape: f32[1], index: 0, kind: input, shape index: {}]   ;;  %s154_s1 = inlined_call_operand.hbm [shape: f32[1,2048], index: 1, kind: input, shape index: {}]   ;;  %s155_s2 = inlined_call_operand.hbm [shape: f32[1,2048], index: 2, kind: output, shape index: {}]  }
   0x1   :  { %9 = vsyncpa [#allocation6], 0  ;;  %s109_s9 = smov [#allocation4]   ;;  %s61_s13 = scalar_lea.hbm %s154_s1, 256 }
   0x2   :  { %s16_s10 = sshll.u32 %s109_s9, 4  ;;  %p62_p0 = scmp.ne.s32.totalorder %s154_s1, %s61_s13  ;;  %s17_s10 = int_to_ptr.vmem [resolvable:$true] %s16_s10 }
   0x3   :  { %p65_p1 = scmp.lt.u32.totalorder %s61_s13, %s154_s1 }
   0x5   :  { %p67_p2 = pnand %p65_p1, %p62_p0 }
   0x7   :  { %70 = shalt.err (!%p67_p2)
}
   0x8   :  { %s71_s18 = scalar_lea.vmem %s17_s10, 256  ;;  %p76_p4 = scmp.lt.s32.totalorder %s17_s10, %s17_s10 }
   0x9   :  { %p72_p3 = scmp.ne.s32.totalorder %s17_s10, %s71_s18  ;;  %p77_p5 = scmp.lt.s32.totalorder %s71_s18, %s71_s18 }
   0xb   :  { %p78_p6 = por %p77_p5, %p76_p4 }
   0xd   :  { %p79_p7 = pnand %p78_p6, %p72_p3 }
   0xf   :  { %82 = shalt.err (!%p79_p7)
}
  0x10   :  { %19 = dma.hbm_to_vmem [thread:$0]  %s154_s1, 256, %s17_s10, [#allocation5]  }
  0x11   :  { %105 = dma.done.wait [#allocation5], 256  }
  0x12   :  { %106 = vsyncadd [#allocation5], 4294967040  ;;  %s26_s23 = smul.f32 0.5, %s153_s0  ;;  %v24_v1 = vld [vmem:[#allocation4] sm:$0xff]  ;;  %v25_v2 = vld [vmem:[#allocation4 + $0x8] sm:$0xff]  ;;  %s110_s24 = smov [#allocation7]  }
  0x13   :  { %s46_s1 = sshll.u32 %s110_s24, 4  ;;  %s47_s1 = int_to_ptr.vmem [resolvable:$true] %s46_s1 }
  0x14   :  { %v27_v0 = vstv %s26_s23  ;;  %s83_s0 = scalar_lea.vmem %s47_s1, 256  ;;  %p88_p9 = scmp.lt.s32.totalorder %s47_s1, %s47_s1 }
  0x15   :  { %v28_v3 = vmul.f32 %v27_v0, %v24_v1  ;;  %v29_v4 = vmul.f32 %v27_v0, %v25_v2  ;;  %p84_p8 = scmp.ne.s32.totalorder %s47_s1, %s83_s0  ;;  %p89_p10 = scmp.lt.s32.totalorder %s83_s0, %s83_s0 }
  0x17   :  { %57 = vtanh.f32 %v28_v3  ;;  %p90_p11 = por %p89_p10, %p88_p9 }
  0x18   :  { %59 = vtanh.f32 %v29_v4 }
  0x19   :  { %p91_p12 = pnand %p90_p11, %p84_p8 }
  0x21   :  { %v58_v5 = vpop.eup %57 }
  0x22   :  { %v60_v6 = vpop.eup %59  ;;  %v32_v7 = vadd.f32 1.0, %v58_v5 }
  0x23   :  { %v33_v8 = vadd.f32 1.0, %v60_v6 }
  0x24   :  { %v34_v9 = vmul.f32 0.5, %v32_v7 }
  0x25   :  { %v35_v10 = vmul.f32 0.5, %v33_v8 }
  0x26   :  { %v36_v11 = vmul.f32 %v34_v9, %v24_v1 }
  0x27   :  { %v37_v12 = vmul.f32 %v35_v10, %v25_v2 }
  0x28   :  { %38 = vst [vmem:[#allocation7] sm:$0xff] %v36_v11 }
  0x29   :  { %39 = vst [vmem:[#allocation7 + $0x8] sm:$0xff] %v37_v12 }
  0x2a   :  { %94 = shalt.err (!%p91_p12)
}
  0x2b   :  { %s95_s27 = scalar_lea.hbm %s155_s2, 256 }
  0x2c   :  { %p96_p13 = scmp.ne.s32.totalorder %s155_s2, %s95_s27  ;;  %p99_p0 = scmp.lt.u32.totalorder %s95_s27, %s155_s2 }
  0x2e   :  { %p101_p1 = pnand %p99_p0, %p96_p13 }
  0x30   :  { %104 = shalt.err (!%p101_p1)
}
  0x31   :  { %49 = dma.vmem_to_hbm [thread:$0]  %s47_s1, 256, %s155_s2, [#allocation6]  }
  0x32   :  { %107 = dma.done.wait [#allocation6], 256  }
  0x33   :  { %108 = vsyncadd [#allocation6], 4294967040 }
  0x34   :  { %53 = vsyncpa [#allocation5], 1 }
  0x35   :  { %54 = vsyncpa [#allocation6], 1 }

</bundles_post_ra>
